<compile_context>
chip_gen: v7x
topology: tpu7x:2x2x1
jax: 0.10.0
libtpu: 0.0.40
codegen_flags: <defaults>
</compile_context>

<pallas_src>
import functools

import jax
import jax.numpy as jnp
from jax.experimental import pallas as pl
from jax.experimental.pallas import tpu as pltpu


def _dma_slice_kernel(sl, emb_hbm, out_hbm, sem):
    """Copy rows [0, sl) of the table straight HBM -> HBM with one DMA.

    `sl` is a static Python int (closed over via functools.partial), so the
    source slice is static/contiguous and lowers to a single DMA descriptor.
    """
    cp = pltpu.make_async_copy(emb_hbm.at[pl.ds(0, sl), :], out_hbm, sem)
    cp.start()
    cp.wait()


def learned_position_embeddings_forward(x, emb_weight, *, force_pallas=False,
                                        min_kernel_bytes=1 << 20):
    """Pallas equivalent of LearnedPositionEmbeddings.forward(x).

    x          : any array whose axis 1 is the sequence length (only its shape
                 is used, exactly as in the PyTorch module).
    emb_weight : (seq_len, model_dim) embedding table.
    returns    : (sl, model_dim) == emb_weight[:sl].

    force_pallas   : skip the XLA fast paths and always run the DMA kernel
                     (useful when this op is fused into a larger Pallas graph
                     or for testing).
    min_kernel_bytes : below this output size, a standalone call just uses
                     lax.slice (kernel launch overhead would dominate).
    """
    sl = x.shape[1]
    seq_len, model_dim = emb_weight.shape
    assert sl <= seq_len, "sequence length exceeds learned position table"

    # Degenerate case: no positions requested.
    if sl == 0:
        return jnp.zeros((0, model_dim), emb_weight.dtype)

    out_bytes = sl * model_dim * jnp.dtype(emb_weight.dtype).itemsize
    if not force_pallas:
        if sl == seq_len:
            # Whole table requested: no copy needed at all.
            return emb_weight
        if out_bytes < min_kernel_bytes:
            # Tiny standalone slice: XLA's contiguous slice is already optimal;
            # the fixed pallas_call launch cost would dominate.
            return jax.lax.slice_in_dim(emb_weight, 0, sl, axis=0)

    # Direct HBM->HBM DMA: no BlockSpec tiling, no VMEM buffers, no grid.
    return pl.pallas_call(
        functools.partial(_dma_slice_kernel, sl),
        out_shape=jax.ShapeDtypeStruct((sl, model_dim), emb_weight.dtype),
        in_specs=[pl.BlockSpec(memory_space=pl.ANY)],   # raw HBM ref, no auto-DMA
        out_specs=pl.BlockSpec(memory_space=pl.ANY),    # output written by our DMA
        scratch_shapes=[pltpu.SemaphoreType.DMA(())],
    )(emb_weight)


def get_fixed_embedding(ind, emb_weight):
    """Equivalent of LearnedPositionEmbeddings.get_fixed_embedding(ind, dev)."""
    # Plain dynamic slice; far too tiny to merit a kernel.
    return jax.lax.dynamic_slice_in_dim(emb_weight, ind, 1, axis=0)[None, ...]


if __name__ == "__main__":
    # Small shapes consistent with the module's forward pass.
    seq_len = 16       # max positions in the learned table
    model_dim = 128    # embedding dim (lane-aligned)
    init_std = 0.02

    key = jax.random.PRNGKey(0)
    k_emb, k_x = jax.random.split(key)

    # Deterministic init matching emb.weight.data.normal_(0, 0.02).
    emb_weight = init_std * jax.random.normal(
        k_emb, (seq_len, model_dim), dtype=jnp.float32)

    # Example input: token ids of shape (batch, sl); only x.shape[1] matters.
    batch, sl = 2, 8
    x = jax.random.randint(k_x, (batch, sl), 0, seq_len, dtype=jnp.int32)

    # 1) Force the Pallas DMA kernel so it is actually exercised.
    out = learned_position_embeddings_forward(x, emb_weight, force_pallas=True)
    out = jax.block_until_ready(out)
    expected = emb_weight[:sl]
    assert out.shape == (sl, model_dim), out.shape
    assert out.dtype == expected.dtype
    assert jnp.allclose(out, expected), "pallas DMA kernel mismatch vs reference"

    # 2) Auto-dispatch fast path (tiny standalone slice -> lax.slice).
    x5 = x[:, :5]
    out_fast = jax.block_until_ready(
        learned_position_embeddings_forward(x5, emb_weight))
    assert out_fast.shape == (5, model_dim)
    assert jnp.allclose(out_fast, emb_weight[:5]), "fast-path mismatch"

    # 3) sl == seq_len fast path (identity, zero HBM traffic).
    x_full = jnp.zeros((batch, seq_len), dtype=jnp.int32)
    out_full = jax.block_until_ready(
        learned_position_embeddings_forward(x_full, emb_weight))
    assert out_full.shape == (seq_len, model_dim)
    assert jnp.allclose(out_full, emb_weight), "full-table path mismatch"

    # 4) Sanity-check the fixed-embedding helper.
    fixed = jax.block_until_ready(get_fixed_embedding(3, emb_weight))
    assert fixed.shape == (1, 1, model_dim)
    assert jnp.allclose(fixed[0, 0], emb_weight[3])

    print("KERNEL_OK")
</pallas_src>

<mosaic_0001>
module attributes {stable_mosaic.version = 11 : i64} {
  func.func @_dma_slice_kernel(%arg0: memref<16x128xf32, #tpu.memory_space<any>>, %arg1: memref<8x128xf32, #tpu.memory_space<any>>, %arg2: memref<!tpu.dma_semaphore, #tpu.memory_space<semaphore_mem>>) attributes {dimension_semantics = [], scalar_prefetch = 0 : i64, scratch_operands = 1 : i64, tpu.core_type = #tpu.core_type<tc>} {
    %c0_i32 = arith.constant 0 : i32
    %c0_i32_0 = arith.constant 0 : i32
    %0 = tpu.memref_slice %arg0[%c0_i32, %c0_i32_0] : memref<16x128xf32, #tpu.memory_space<any>> -> memref<8x128xf32, #tpu.memory_space<any>>
    tpu.enqueue_dma source(%0 : memref<8x128xf32, #tpu.memory_space<any>>) target(%arg1 : memref<8x128xf32, #tpu.memory_space<any>>) target_semaphore(%arg2 : memref<!tpu.dma_semaphore, #tpu.memory_space<semaphore_mem>>)
    %c0_i32_1 = arith.constant 0 : i32
    %c0_i32_2 = arith.constant 0 : i32
    %1 = tpu.memref_slice %arg0[%c0_i32_1, %c0_i32_2] : memref<16x128xf32, #tpu.memory_space<any>> -> memref<8x128xf32, #tpu.memory_space<any>>
    tpu.wait_dma2 semaphore(%arg2 : memref<!tpu.dma_semaphore, #tpu.memory_space<semaphore_mem>>) src(%1 : memref<8x128xf32, #tpu.memory_space<any>>) dst(%arg1 : memref<8x128xf32, #tpu.memory_space<any>>)
    return
  }
}

</mosaic_0001>

<bundles_post_ra>
// kernel: tpu_custom_call.1
= control target key start
LH: loop header
LB: loop body
LE: loop exit
PB: predicated region body
PF: predicated region fallthrough
CT: control target
= control target key end

     0   :  { %s34_s6 = smov [#allocation2]   ;;  %s35_s7 = smov [#allocation3]   ;;  %s53_s0 = inlined_call_operand.hbm [shape: f32[16,128], index: 0, kind: input, shape index: {}]   ;;  %s54_s1 = inlined_call_operand.hbm [shape: f32[8,128], index: 1, kind: output, shape index: {}]  }
   0x1   :  { %s36_s8 = smov 0  }
   0x2   :  { %18 = dma.general %s53_s0, 128, %s54_s1, %s34_s6, %s35_s7, [#allocation4], %s36_s8, 0  }
   0x3   :  { %32 = dma.done.wait [#allocation2], 128 }
   0x4   :  { %33 = vsyncadd [#allocation2], 4294967168 }
   0x5   :  { %22 = vsyncmov [#allocation2] }
   0x8   :  { %s23_s13 = vpop.sfrf %22 }
   0x9   :  { %p28_p0 = scmp.ne.s32.totalorder %s23_s13, 0 }
   0xb   :  { %27 = shalt.err (%p28_p0)  }

</bundles_post_ra>
